<compile_context>
chip_gen: v5e
topology: v5e:2x2
jax: 0.10.0
libtpu: 0.0.40
codegen_flags: <defaults>
</compile_context>

<pallas_src>
import jax
import jax.numpy as jnp
import numpy as np
from jax.experimental import pallas as pl
from jax.experimental.pallas import tpu as pltpu


# --------------------------------------------------------------------------------------
# Kernel 1: per-sample Conv (selected-subject weight, bias folded, single im2col matmul)
#           + ELU + per-channel BN partial statistics.
# --------------------------------------------------------------------------------------
def _make_conv_elu_kernel(ks, T_out):
    def kernel(sid_ref, w_ref, x_ref, h_ref, stats_ref):
        # sid_ref:   (B,) int32 subject ids (scalar prefetch; already consumed by the
        #            weight index_map, unused in the body)
        # w_ref:     (1, K, ks*C+1)  selected subject's conv weight, bias = last column
        # x_ref:     (1, C, n_times) one sample of the full, un-sliced input
        # h_ref:     (1, K, T_out)   ELU(conv) activations for this sample
        # stats_ref: (1, K, 2)       per-channel [sum, sum_of_squares] over time
        del sid_ref
        x = x_ref[0]                                        # (C, n_times)

        # im2col slab, built once per grid step; row order = j*C + c, bias row last.
        # (windows use indices [j, j+T_out) <= n_times-2, so the subject-code column
        #  at index n_times-1 is never read -> no host slice copy needed)
        cols = [x[:, j:j + T_out] for j in range(ks)]
        cols.append(jnp.ones((1, T_out), jnp.float32))
        patch = jnp.concatenate(cols, axis=0)               # (ks*C+1, T_out)

        # single MXU matmul per grid step (contraction ks*C+1)
        res = jnp.dot(w_ref[0], patch, preferred_element_type=jnp.float32)   # (K, T_out)

        # ELU(alpha=1)
        act = jnp.where(res > 0.0, res, jnp.exp(jnp.minimum(res, 0.0)) - 1.0)
        h_ref[0] = act

        # per-channel partial BN statistics (summed over time), reduced on host
        s = jnp.sum(act, axis=1, keepdims=True)             # (K, 1)
        ss = jnp.sum(act * act, axis=1, keepdims=True)      # (K, 1)
        stats_ref[0] = jnp.concatenate([s, ss], axis=1)     # (K, 2)

    return kernel


# --------------------------------------------------------------------------------------
# Kernel 2: out = h @ W_final + bias_final  (BN scale/shift and avg-pool already folded
#           into W_final / bias_final on the host), resident (Bb, O) accumulator.
# --------------------------------------------------------------------------------------
def _fc_accum_kernel(h_ref, w_ref, b_ref, out_ref):
    # h_ref:   (Bb, Tc)  chunk of activations, lanes = flattened (k, t)
    # w_ref:   (Tc, O)   chunk of the BN/pool-folded FC weight
    # b_ref:   (1, O)    folded bias (FC bias + BN shift term)
    # out_ref: (Bb, O)   resident accumulator across the contraction grid axis
    @pl.when(pl.program_id(1) == 0)
    def _init():
        out_ref[...] = jnp.zeros_like(out_ref) + b_ref[...]

    out_ref[...] = out_ref[...] + jnp.dot(h_ref[...], w_ref[...],
                                          preferred_element_type=jnp.float32)


# --------------------------------------------------------------------------------------
# VMEM budgeting helpers (count ALL pipelined blocks and the x2 double buffering)
# --------------------------------------------------------------------------------------
def _vmem_limit_bytes(block_bytes, scratch_bytes=0):
    need = 2 * sum(block_bytes) + scratch_bytes
    return int(min(max(4 * need, 16 << 20), 48 << 20))


def _pick_contraction_chunk(kt, batch, out_dim, budget_bytes=24 << 20):
    # live bytes = double-buffered input blocks + resident output/bias blocks (f32)
    def live_bytes(c):
        return 2 * (batch * c + c * out_dim) * 4 + (batch * out_dim + out_dim) * 4

    if live_bytes(kt) <= budget_bytes:
        return kt
    best = None
    c = 128                                    # chunk must be lane-aligned and divide kt
    while c <= kt:
        if kt % c == 0 and live_bytes(c) <= budget_bytes:
            best = c
        c += 128
    return best if best is not None else kt


# --------------------------------------------------------------------------------------
# Wrapper
# --------------------------------------------------------------------------------------
def subject_onehot_convnet_forward(x, params, *, num_kernels, num_subjects,
                                   kernel_size, pool_size):
    B, C, n_times = x.shape
    K, S, ks, ps = num_kernels, num_subjects, kernel_size, pool_size
    T = n_times - 1
    T_out = T - ks + 1
    n_pool = T_out // ps
    O = params["b_fc"].shape[0]
    ksC1 = ks * C + 1

    # ---- subject ids (scalar prefetch) --------------------------------------------
    # NOTE: float32 floor-divide decode of (sid+1)*1e6 is exact only for sid <~ 15;
    # the clip guards the dynamic weight DMA but silently remaps bad ids.
    subject_ids = jnp.floor_divide(x[:, 0, -1], 1e6).astype(jnp.int32) - 1
    subject_ids = jnp.clip(subject_ids, 0, S - 1)

    # ---- per-subject conv weight table, one-hot & bias folded -----------------------
    # (S*K, C, 1, ks) -> (S, K, ks*C+1); im2col row order = j*C + c, bias last column.
    w_flat = jnp.transpose(params["w_conv"][:, :, 0, :], (0, 2, 1)).reshape(S * K, ks * C)
    w_aug = jnp.concatenate([w_flat, params["b_conv"][:, None]], axis=1)
    w_aug = w_aug.reshape(S, K, ksC1).astype(jnp.float32)

    # ---- Kernel 1: per-sample conv + ELU + BN partial stats -------------------------
    k1_blocks = [K * ksC1 * 4, C * n_times * 4, K * T_out * 4, K * 2 * 4]
    k1_scratch = 3 * ksC1 * T_out * 4            # im2col slab + matmul temporaries
    h, stats = pl.pallas_call(
        _make_conv_elu_kernel(ks, T_out),
        out_shape=(jax.ShapeDtypeStruct((B, K, T_out), jnp.float32),
                   jax.ShapeDtypeStruct((B, K, 2), jnp.float32)),
        grid_spec=pltpu.PrefetchScalarGridSpec(
            num_scalar_prefetch=1,
            grid=(B,),
            in_specs=[
                # only the selected subject's (K, ks*C+1) weight row is DMA'd per step
                pl.BlockSpec((1, K, ksC1), lambda b, sid: (sid[b], 0, 0)),
                # full, un-sliced x (no host copy); windows never read the last column
                pl.BlockSpec((1, C, n_times), lambda b, sid: (b, 0, 0)),
            ],
            out_specs=[
                pl.BlockSpec((1, K, T_out), lambda b, sid: (b, 0, 0)),
                pl.BlockSpec((1, K, 2), lambda b, sid: (b, 0, 0)),
            ]),
        compiler_params=pltpu.CompilerParams(
            dimension_semantics=("parallel",),
            vmem_limit_bytes=_vmem_limit_bytes(k1_blocks, k1_scratch)),
    )(subject_ids, w_aug, x)

    # ---- host glue (tiny, weight-sized XLA ops) -------------------------------------
    # global train-mode BN statistics from the kernel-1 side output (one-pass variance)
    n = B * T_out
    mean = jnp.sum(stats[:, :, 0], axis=0) / n                           # (K,)
    var = jnp.maximum(jnp.sum(stats[:, :, 1], axis=0) / n - mean * mean, 0.0)
    scale = params["bn_gamma"].astype(jnp.float32) * jax.lax.rsqrt(var + 1e-5)
    shift = params["bn_beta"].astype(jnp.float32) - mean * scale

    # fold avg-pool and BN into the FC weight / bias:
    #   out = sum_{k,t} h[b,k,t]*scale[k]*w_eff[k,t,o] + sum_k shift[k]*colsum(w_eff)[k,o] + b_fc
    t_idx = jnp.arange(T_out)[:, None]
    p_idx = jnp.arange(n_pool)[None, :]
    pool_mat = jnp.where(t_idx // ps == p_idx, 1.0 / ps, 0.0).astype(jnp.float32)   # (T_out, n_pool)
    wfc3 = params["w_fc"].reshape(O, K, n_pool).transpose(1, 2, 0).astype(jnp.float32)  # (K, n_pool, O)
    w_eff = jnp.einsum("tp,kpo->kto", pool_mat, wfc3)                    # (K, T_out, O)
    w_final = (scale[:, None, None] * w_eff).reshape(K * T_out, O)       # (K*T_out, O)
    bias_final = (params["b_fc"].astype(jnp.float32)
                  + shift @ jnp.sum(w_eff, axis=1))[None, :]             # (1, O)

    # ---- Kernel 2: single big matmul with resident accumulator ----------------------
    h2 = h.reshape(B, K * T_out)                 # contiguous merge of the last two dims
    KT = K * T_out

    # batch block (parallel axis -> v7x's 2 TensorCores can split it; safe because BN
    # stats were hoisted to kernel 1), must be a multiple of 8 or the full batch.
    if B % 8 == 0 and B >= 16:
        Bb2 = B // 2 if (B // 2) % 8 == 0 else 8
    else:
        Bb2 = B
    grid_b2 = B // Bb2

    Tc = _pick_contraction_chunk(KT, Bb2, O)
    grid_kt = KT // Tc
    k2_blocks = [Bb2 * Tc * 4, Tc * O * 4, O * 4, Bb2 * O * 4]

    # TODO(synk): nn.Dropout is applied as identity (inference behaviour); PyTorch
    # train-mode dropout RNG cannot be reproduced in Pallas.
    out = pl.pallas_call(
        _fc_accum_kernel,
        out_shape=jax.ShapeDtypeStruct((B, O), jnp.float32),
        grid=(grid_b2, grid_kt),
        in_specs=[
            pl.BlockSpec((Bb2, Tc), lambda i, j: (i, j)),                # h chunk
            pl.BlockSpec((Tc, O), lambda i, j: (j, 0)),                  # folded FC weight chunk
            pl.BlockSpec((1, O), lambda i, j: (0, 0)),                   # folded bias
        ],
        out_specs=pl.BlockSpec((Bb2, O), lambda i, j: (i, 0)),           # resident accumulator
        compiler_params=pltpu.CompilerParams(
            dimension_semantics=("parallel", "arbitrary"),
            vmem_limit_bytes=_vmem_limit_bytes(k2_blocks)),
    )(h2, w_final, bias_final)
    return out


# --------------------------------------------------------------------------------------
# Pure-JAX reference (mirrors the PyTorch forward, train-mode BN, dropout=identity)
# --------------------------------------------------------------------------------------
def reference_forward(x, params, *, num_kernels, num_subjects, kernel_size, pool_size):
    K, S, ps = num_kernels, num_subjects, pool_size
    B = x.shape[0]
    subject_ids = jnp.floor_divide(x[:, 0, -1], 1e6).astype(jnp.int32) - 1
    onehot = jax.nn.one_hot(subject_ids, S, dtype=jnp.float32)
    xd = x[:, :, :-1][:, :, None, :]                                       # (B, C, 1, T)
    conv = jax.lax.conv_general_dilated(
        xd, params["w_conv"], window_strides=(1, 1), padding="VALID",
        dimension_numbers=("NCHW", "OIHW", "NCHW"))
    conv = conv + params["b_conv"][None, :, None, None]                    # (B, SK, 1, T_out)
    T_out = conv.shape[-1]
    conv = conv.reshape(B, S, K, 1, T_out)
    gated = (conv * onehot[:, :, None, None, None]).sum(axis=1)            # (B, K, 1, T_out)
    act = jnp.where(gated > 0.0, gated, jnp.exp(jnp.minimum(gated, 0.0)) - 1.0)
    mean = act.mean(axis=(0, 2, 3), keepdims=True)
    var = ((act - mean) ** 2).mean(axis=(0, 2, 3), keepdims=True)
    bn = (act - mean) / jnp.sqrt(var + 1e-5)
    bn = bn * params["bn_gamma"][None, :, None, None] + params["bn_beta"][None, :, None, None]
    n_pool = T_out // ps
    pooled = bn[..., : n_pool * ps].reshape(B, K, 1, n_pool, ps).mean(axis=-1)
    flat = pooled.reshape(B, -1)
    return flat @ params["w_fc"].T + params["b_fc"][None, :]


if __name__ == "__main__":
    # small shapes consistent with the module's forward
    B, C, n_times = 2, 4, 33
    K, S, ks, ps, O = 8, 3, 5, 5, 4            # num_kernels, num_subjects, kernel, pool, outputs
    SK = K * S
    T = n_times - 1
    T_out = T - ks + 1                          # 28
    n_pool = T_out // ps                        # 5  (AvgPool floor truncation exercised)

    key = jax.random.PRNGKey(0)
    k_x, k_w, k_b, k_g, k_be, k_fw, k_fb = jax.random.split(key, 7)
    params = dict(
        w_conv=0.1 * jax.random.normal(k_w, (SK, C, 1, ks), jnp.float32),
        b_conv=0.1 * jax.random.normal(k_b, (SK,), jnp.float32),
        bn_gamma=1.0 + 0.1 * jax.random.normal(k_g, (K,), jnp.float32),
        bn_beta=0.1 * jax.random.normal(k_be, (K,), jnp.float32),
        w_fc=0.1 * jax.random.normal(k_fw, (O, K * n_pool), jnp.float32),
        b_fc=0.1 * jax.random.normal(k_fb, (O,), jnp.float32),
    )

    x = jax.random.normal(k_x, (B, C, n_times), jnp.float32)
    # encode (subject_id + 1) * 1e6 in the last time sample of channel 0
    subj = jnp.array([1.0, 3.0], dtype=jnp.float32)        # -> subjects 0 and 2
    x = x.at[:, 0, -1].set(subj * 1e6 + 345.0)

    out = subject_onehot_convnet_forward(
        x, params, num_kernels=K, num_subjects=S, kernel_size=ks, pool_size=ps)
    out = jax.block_until_ready(out)

    ref = jax.block_until_ready(reference_forward(
        x, params, num_kernels=K, num_subjects=S, kernel_size=ks, pool_size=ps))

    np.testing.assert_allclose(np.asarray(out), np.asarray(ref), rtol=2e-3, atol=2e-3)
    print("KERNEL_OK")
</pallas_src>

<mosaic_0001>
module attributes {stable_mosaic.version = 11 : i64} {
  func.func @kernel(%arg0: i32, %arg1: memref<2xi32, #tpu.memory_space<smem>>, %arg2: memref<1x8x21xf32, #tpu.memory_space<vmem>>, %arg3: memref<1x4x33xf32, #tpu.memory_space<vmem>>, %arg4: memref<1x8x28xf32, #tpu.memory_space<vmem>>, %arg5: memref<1x8x2xf32, #tpu.memory_space<vmem>>) attributes {dimension_semantics = [#tpu.dimension_semantics<parallel>], iteration_bounds = array<i64: 2>, scalar_prefetch = 1 : i64, scratch_operands = 0 : i64, tpu.core_type = #tpu.core_type<tc>, window_params = [{transform_indices = @transform_0, window_bounds = array<i64: 1, 8, 21>}, {transform_indices = @transform_1, window_bounds = array<i64: 1, 4, 33>}, {transform_indices = @transform_2, window_bounds = array<i64: 1, 8, 28>}, {transform_indices = @transform_3, window_bounds = array<i64: 1, 8, 2>}]} {
    %c0 = arith.constant 0 : index
    %c0_0 = arith.constant 0 : index
    %c0_1 = arith.constant 0 : index
    %0 = vector.load %arg3[%c0, %c0_0, %c0_1] : memref<1x4x33xf32, #tpu.memory_space<vmem>>, vector<1x4x33xf32>
    %1 = vector.shape_cast %0 : vector<1x4x33xf32> to vector<4x33xf32>
    %2 = vector.extract_strided_slice %1 {offsets = [0, 0], sizes = [4, 28], strides = [1, 1]} : vector<4x33xf32> to vector<4x28xf32>
    %3 = vector.extract_strided_slice %1 {offsets = [0, 1], sizes = [4, 28], strides = [1, 1]} : vector<4x33xf32> to vector<4x28xf32>
    %4 = vector.extract_strided_slice %1 {offsets = [0, 2], sizes = [4, 28], strides = [1, 1]} : vector<4x33xf32> to vector<4x28xf32>
    %5 = vector.extract_strided_slice %1 {offsets = [0, 3], sizes = [4, 28], strides = [1, 1]} : vector<4x33xf32> to vector<4x28xf32>
    %6 = vector.extract_strided_slice %1 {offsets = [0, 4], sizes = [4, 28], strides = [1, 1]} : vector<4x33xf32> to vector<4x28xf32>
    %cst = arith.constant 1.000000e+00 : f32
    %7 = vector.broadcast %cst : f32 to vector<1x28xf32>
    %8 = tpu.concatenate %2, %3, %4, %5, %6, %7 in 0 : vector<4x28xf32>, vector<4x28xf32>, vector<4x28xf32>, vector<4x28xf32>, vector<4x28xf32>, vector<1x28xf32> -> vector<21x28xf32>
    %c0_2 = arith.constant 0 : index
    %c0_3 = arith.constant 0 : index
    %c0_4 = arith.constant 0 : index
    %9 = vector.load %arg2[%c0_2, %c0_3, %c0_4] : memref<1x8x21xf32, #tpu.memory_space<vmem>>, vector<1x8x21xf32>
    %10 = vector.shape_cast %9 : vector<1x8x21xf32> to vector<8x21xf32>
    %cst_5 = arith.constant dense<0.000000e+00> : vector<8x28xf32>
    %11 = tpu.matmul %10, %8, %cst_5 {dimension_numbers = #tpu.dot_dimension_numbers<[1], [0], [0], [1], [0, 0, 1, 1], [], []>} : vector<8x21xf32>, vector<21x28xf32>, vector<8x28xf32> -> vector<8x28xf32>
    %cst_6 = arith.constant 0.000000e+00 : f32
    %12 = vector.broadcast %cst_6 : f32 to vector<8x28xf32>
    %13 = arith.cmpf ogt, %11, %12 : vector<8x28xf32>
    %cst_7 = arith.constant 0.000000e+00 : f32
    %14 = vector.broadcast %cst_7 : f32 to vector<8x28xf32>
    %15 = arith.minimumf %11, %14 : vector<8x28xf32>
    %16 = math.exp %15 : vector<8x28xf32>
    %cst_8 = arith.constant 1.000000e+00 : f32
    %17 = vector.broadcast %cst_8 : f32 to vector<8x28xf32>
    %18 = arith.subf %16, %17 : vector<8x28xf32>
    %19 = arith.select %13, %11, %18 : vector<8x28xi1>, vector<8x28xf32>
    %c0_9 = arith.constant 0 : index
    %c0_10 = arith.constant 0 : index
    %c0_11 = arith.constant 0 : index
    %20 = vector.load %arg4[%c0_9, %c0_10, %c0_11] : memref<1x8x28xf32, #tpu.memory_space<vmem>>, vector<1x8x28xf32>
    %21 = vector.shape_cast %20 : vector<1x8x28xf32> to vector<8x28xf32>
    %22 = vector.shape_cast %19 : vector<8x28xf32> to vector<1x8x28xf32>
    tpu.vector_store %arg4[%c0_9, %c0_10, %c0_11], %22 {strides = array<i32>} : memref<1x8x28xf32, #tpu.memory_space<vmem>>, vector<1x8x28xf32>,
    %cst_12 = arith.constant dense<0.000000e+00> : vector<8xf32>
    %23 = vector.multi_reduction <add>, %19, %cst_12 [1] : vector<8x28xf32> to vector<8xf32>
    %24 = vector.shape_cast %23 : vector<8xf32> to vector<8x1xf32>
    %25 = arith.mulf %19, %19 : vector<8x28xf32>
    %cst_13 = arith.constant dense<0.000000e+00> : vector<8xf32>
    %26 = vector.multi_reduction <add>, %25, %cst_13 [1] : vector<8x28xf32> to vector<8xf32>
    %27 = vector.shape_cast %26 : vector<8xf32> to vector<8x1xf32>
    %28 = tpu.concatenate %24, %27 in 1 : vector<8x1xf32>, vector<8x1xf32> -> vector<8x2xf32>
    %c0_14 = arith.constant 0 : index
    %c0_15 = arith.constant 0 : index
    %c0_16 = arith.constant 0 : index
    %29 = vector.load %arg5[%c0_14, %c0_15, %c0_16] : memref<1x8x2xf32, #tpu.memory_space<vmem>>, vector<1x8x2xf32>
    %30 = vector.shape_cast %29 : vector<1x8x2xf32> to vector<8x2xf32>
    %31 = vector.shape_cast %28 : vector<8x2xf32> to vector<1x8x2xf32>
    tpu.vector_store %arg5[%c0_14, %c0_15, %c0_16], %31 {strides = array<i32>} : memref<1x8x2xf32, #tpu.memory_space<vmem>>, vector<1x8x2xf32>,
    return
  }
  func.func @transform_0(%arg0: i32, %arg1: memref<2xi32, #tpu.memory_space<smem>>) -> (i32, i32, i32) {
    %0 = arith.index_cast %arg0 : i32 to index
    %1 = memref.load %arg1[%0] : memref<2xi32, #tpu.memory_space<smem>>
    %c0_i32 = arith.constant 0 : i32
    %c0_i32_0 = arith.constant 0 : i32
    %c0_i32_1 = arith.constant 0 : i32
    return %1, %c0_i32, %c0_i32_0 : i32, i32, i32
  }
  func.func @transform_1(%arg0: i32, %arg1: memref<2xi32, #tpu.memory_space<smem>>) -> (i32, i32, i32) {
    %c0_i32 = arith.constant 0 : i32
    %c0_i32_0 = arith.constant 0 : i32
    %c0_i32_1 = arith.constant 0 : i32
    return %arg0, %c0_i32, %c0_i32_0 : i32, i32, i32
  }
  func.func @transform_2(%arg0: i32, %arg1: memref<2xi32, #tpu.memory_space<smem>>) -> (i32, i32, i32) {
    %c0_i32 = arith.constant 0 : i32
    %c0_i32_0 = arith.constant 0 : i32
    %c0_i32_1 = arith.constant 0 : i32
    return %arg0, %c0_i32, %c0_i32_0 : i32, i32, i32
  }
  func.func @transform_3(%arg0: i32, %arg1: memref<2xi32, #tpu.memory_space<smem>>) -> (i32, i32, i32) {
    %c0_i32 = arith.constant 0 : i32
    %c0_i32_0 = arith.constant 0 : i32
    %c0_i32_1 = arith.constant 0 : i32
    return %arg0, %c0_i32, %c0_i32_0 : i32, i32, i32
  }
}

</mosaic_0001>

<bundles_post_ra>
// kernel: tpu_custom_call.1
= control target key start
LH: loop header
LB: loop body
LE: loop exit
PB: predicated region body
PF: predicated region fallthrough
CT: control target
= control target key end

     0   :  { %s733_s18 = smov [#allocation3]   ;;  %s1009_s0 = inlined_call_operand.hbm [shape: s32[2], index: 0, kind: input, shape index: {}]   ;;  %s1010_s1 = inlined_call_operand.hbm [shape: f32[3,8,21], index: 1, kind: input, shape index: {}]   ;;  %s1011_s2 = inlined_call_operand.hbm [shape: f32[2,4,33], index: 2, kind: input, shape index: {}]   ;;  %s1012_s3 = inlined_call_operand.hbm [shape: f32[2,8,28], index: 3, kind: output, shape index: {0}]   ;;  %s1013_s4 = inlined_call_operand.vmem [shape: f32[2,8,2], index: 4, kind: output, shape index: {1}]  }
   0x1   :  { %1016 = sst [smem:[#allocation17_spill]] %s1010_s1  ;;  %s11_s17 = sshll.u32 %s1009_s0, 4  ;;  %s12_s17 = int_to_ptr.hbm [resolvable:$true] %s11_s17 }
   0x2   :  { %14 = dma.hbm_to_smem %s12_s17, 16, %s733_s18, [#allocation2] }
   0x3   :  { %691 = dma.done.wait [#allocation2], 16 }
   0x4   :  { %692 = vsyncadd [#allocation2], 4294967280 }
   0x5   :  { %17 = sfence }
   0x6   :  { %18 = vsyncpa [#allocation5], 0 }
   0x7   :  { %20 = vsyncpa [#allocation5 + $0x1], 0 }
   0x8   :  { %21 = vsyncpa [#allocation8], 0 }
   0x9   :  { %23 = vsyncpa [#allocation8 + $0x1], 0 }
   0xa   :  { %24 = vsyncpa [#allocation6], 0 }
   0xb   :  { %26 = vsyncpa [#allocation6 + $0x1], 0  ;;  %s766_s19 = smov 0   ;;  %s768_s20 = smov 0  }
   0xc   :  { %s770_s21 = smov 0   ;;  %s772_s22 = smov 0  }
   0xd   :  { %s774_s0 = smov 0   ;;  %s776_s23 = smov 0  }
   0xe   :  { %s778_s24 = smov 0  }
   0xf LB: > { %s800_s25 = sadd.s32 4294967295, %s731_s24   ;;  %s803_s26 = sadd.s32 1, %s731_s24   ;;  %s731_s24 = sphi %s778_s24, %s1039_s24   ;;  %s727_s23 = sphi %s776_s23, %s1038_s23   ;;  %s723_s0 = sphi %s774_s0, %s1037_s0   ;;  %s719_s22 = sphi %s772_s22, %s1036_s22   ;;  %s715_s21 = sphi %s770_s21, %s1035_s21   ;;  %s711_s20 = sphi %s768_s20, %s1034_s20   ;;  %s707_s19 = sphi %s766_s19, %s1033_s19  }
  0x10   : > { %s36_s27 = sld [smem:[#allocation3 + %s731_s24]]  ;;  %s41_s28 = sadd.s32 1, %s727_s23 }
  0x11   : > { %s37_s29 = sld [smem:[#allocation3 + %s803_s26]]  ;;  %p48_p0 = scmp.ne.s32.totalorder %s727_s23, %s723_s0 }
  0x12   : > { %p49_p1 = scmp.eq.s32.totalorder %s731_s24, 0  ;;  %p54_p2 = scmp.ne.s32.totalorder %s723_s0, %s719_s22 }
  0x13   : > { %p1015_p3 = scmp.eq.s32.totalorder %s800_s25, 0  ;;  %p1014_p6 = scmp.lt.s32.totalorder %s731_s24, 2 }
  0x14   : > { %p816_p5 = por %p49_p1, %p48_p0  ;;  %s156_s6 = sand.u32 1, %s727_s23  }
  0x15   : > { %p823_p7 = por %p1015_p3, %p54_p2  ;;  %s461_s7 = sshll.u32 %s156_s6, 3 }
  0x16   : > { %s160_s9 = scalar_lea.vmem [#allocation4], %s461_s7  ;;  %p847_p9 = pnand %p1014_p6, %p816_p5 }
  0x17   : > { %s38_s8 = ssub.s32 %s36_s27, %s37_s29  ;;  %s828_s10 = sshll.u32 %s160_s9, 4  ;;  %s170_s10 = int_to_ptr.vmem [resolvable:$true] %s828_s10 }
  0x18   : > { %p39_p8 = scmp.eq.s32.totalorder %s38_s8, 0  ;;  %p465_p10 = scmp.ge.s32.totalorder %s731_s24, 1 }
  0x19   : > { %s477_s11 = scalar_select %p816_p5, [#allocation3], [#allocation10] }
  0x1a   : > { %s833_s12 = scalar_select %p39_p8, %s727_s23, %s41_s28  }
  0x1b   : > { %s478_s13 = scalar_select %p816_p5, %s731_s24, 0 }
  0x1c   : > { %1019 = sst [smem:[#allocation16_spill]] %s833_s12  ;;  %s1041_s11 = smov (!%p1014_p6, %s477_s11), [#allocation11] }
  0x1d   : > { %s1043_s13 = smov (!%p1014_p6, %s478_s13), 0  ;;  %p193_p11 = scmp.lt.s32.totalorder %s731_s24, 3 }
  0x1e   : > { %s161_s15 = sld [smem:[%s1041_s11 + %s1043_s13]]  ;;  %s458_s17 = sadd.s32 4294967294, %s731_s24  }
  0x1f   : > { %p853_p12 = pnand %p465_p10, %p193_p11  ;;  %s64_s22 = ssub.s32 %s731_s24, %s803_s26 }
  0x20   : > { %s1022_s1 = sld [smem:[#allocation17_spill]]  ;;  %p863_p13 = scmp.eq.s32.totalorder %s64_s22, 0 }
  0x21   : > { %s67_s8 = sadd.s32 1, %s715_s21  ;;  %p74_p0 = scmp.ne.s32.totalorder %s715_s21, %s711_s20 }
  0x22   : > { %s157_s9 = scalar_lea.sflag [#allocation5], %s156_s6  ;;  %p579_p5 = pneg %p847_p9 }
  0x24   : > { %s462_s18 = sshll.u32 %s161_s15, 3 }
  0x26   : > { %s165_s29 = scalar_lea.hbm %s1022_s1, %s462_s18  ;;  %s582_s18 = scalar_lea.hbm %s1022_s1, 24 }
  0x27   : > { %s167_s7 = sshll.u32 %s165_s29, 4  ;;  %s168_s7 = int_to_ptr.hbm [resolvable:$true] %s167_s7 }
  0x28   : > { %s575_s11 = sshra.s32 %s168_s7, 4  ;;  %s576_s11 = int_to_ptr.hbm [resolvable:$true] %s575_s11 }
  0x29   : > { %s577_s13 = scalar_lea.hbm %s576_s11, 8  ;;  %p583_p11 = scmp.lt.s32.totalorder %s576_s11, %s1022_s1 }
  0x2a   : > { %p578_p2 = scmp.ne.s32.totalorder %s576_s11, %s577_s13  ;;  %p584_p4 = scmp.lt.s32.totalorder %s582_s18, %s577_s13 }
  0x2c   : > { %p580_p8 = pnand %p579_p5, %p578_p2  ;;  %p585_p6 = por %p584_p4, %p583_p11 }
  0x2e   : > { %p581_p10 = pneg %p580_p8 }
  0x30   : > { %p586_p3 = pnand %p585_p6, %p581_p10 }
  0x32   : > { %589 = shalt.err (!%p586_p3)
}
  0x33   : > { %490 = dma.hbm_to_vmem [thread:$0]  (!%p847_p9), %s168_s7, 128, %s170_s10, %s157_s9  }
  0x34   : > { %s885_s6 = scalar_select %p863_p13, %s715_s21, %s67_s8  }
  0x35   : > { %p892_p3 = por %p74_p0, %p49_p1  ;;  %p80_p4 = scmp.ne.s32.totalorder %s711_s20, %s707_s19 }
  0x36   : > { %p104_p6 = scmp.eq.s32.totalorder %s800_s25, 1  ;;  %p110_p2 = scmp.eq.s32.totalorder %s458_s17, 1 }
  0x37   : > { %p1025_p5 = scmp.eq.s32.totalorder %s800_s25, 0  ;;  %s176_s10 = sand.u32 1, %s715_s21  }
  0x38   : > { %p909_p9 = por %p104_p6, %p74_p0  ;;  %p913_p1 = por %p110_p2, %p80_p4 }
  0x39   : > { %p901_p8 = por %p80_p4, %p1025_p5  ;;  %s463_s8 = sshll.u32 %s176_s10, 2 }
  0x3a   : > { %s464_s9 = sshll.u32 %s731_s24, 2  ;;  %s180_s15 = scalar_lea.vmem [#allocation7], %s463_s8 }
  0x3b   : > { %s184_s17 = scalar_lea.hbm %s1011_s2, %s464_s9  ;;  %s188_s27 = sshll.u32 %s180_s15, 4  ;;  %s189_s27 = int_to_ptr.vmem [resolvable:$true] %s188_s27 }
  0x3c   : > { %s186_s18 = sshll.u32 %s184_s17, 4  ;;  %p1029_p13 = scmp.lt.s32.totalorder %s731_s24, 2  ;;  %s187_s18 = int_to_ptr.hbm [resolvable:$true] %s186_s18 }
  0x3d   : > { %s177_s28 = scalar_lea.sflag [#allocation8], %s176_s10  ;;  %s605_s1 = sshra.s32 %s187_s18, 4  ;;  %s606_s1 = int_to_ptr.hbm [resolvable:$true] %s605_s1 }
  0x3e   : > { %p925_p0 = pnand %p1029_p13, %p892_p3  ;;  %s607_s12 = scalar_lea.hbm %s606_s1, 4 }
  0x3f   : > { %p608_p10 = scmp.ne.s32.totalorder %s606_s1, %s607_s12  ;;  %s612_s11 = scalar_lea.hbm %s1011_s2, 8 }
  0x40   : > { %p609_p11 = pneg %p925_p0  ;;  %p613_p3 = scmp.lt.s32.totalorder %s606_s1, %s1011_s2 }
  0x41   : > { %p614_p2 = scmp.lt.s32.totalorder %s612_s11, %s607_s12 }
  0x42   : > { %p610_p4 = pnand %p609_p11, %p608_p10 }
  0x43   : > { %p615_p5 = por %p614_p2, %p613_p3 }
  0x44   : > { %p611_p6 = pneg %p610_p4 }
  0x46   : > { %p616_p13 = pnand %p615_p5, %p611_p6 }
  0x48   : > { %619 = shalt.err (!%p616_p13)
}
  0x49   : > { %493 = dma.hbm_to_vmem [thread:$0]  (!%p925_p0), %s187_s18, 64, %s189_s27, %s177_s28  }
  0x4a   : > { %197 = sbr.rel (%p853_p12) target bundleno = 479 (0x1df), region = 28  ;;  %s199_s10 = sand.u32 (!%p853_p12), 1, %s723_s0  }
  0x4b   : > { %s942_s17 = sshll.u32 (!%p853_p12), %s199_s10, 3  ;;  %s200_s15 = scalar_lea.sflag (!%p853_p12), [#allocation5], %s199_s10 }
  0x4c   : > { %s203_s8 = scalar_lea.vmem (!%p853_p12), [#allocation4], %s942_s17 }
  0x4f   : > { %694 = dma.done.wait (%p823_p7), %s200_s15, 128  }
  0x50   : > { %696 = vsyncadd (%p823_p7), %s200_s15, 4294967168  ;;  %s950_s1 = sand.u32 1, %s711_s20  }
  0x51   : > { %s467_s12 = sshll.u32 %s950_s1, 2  ;;  %s210_s16 = scalar_lea.sflag [#allocation8], %s950_s1 }
  0x52   : > { %s213_s27 = scalar_lea.vmem [#allocation7], %s467_s12 }
  0x53   : > { %698 = dma.done.wait (%p901_p8), %s210_s16, 64  }
  0x54   : > { %700 = vsyncadd (%p901_p8), %s210_s16, 4294967232  ;;  %v251_v0 = vld [vmem:[%s213_s27] sm:$0xf]  ;;  %s734_s18 = smov 124   ;;  %s735_s5 = smov 125   ;;  %vm266_vm0 = vcmask 1043456  }
  0x55   : > { %263 = vrot.lane.b32.xlu0 %v251_v0, %s734_s18  ;;  %v253_v1 = vrot.slane %v251_v0, 4  ;;  %s736_s22 = smov 126   ;;  %s737_s28 = smov 127   ;;  %vm275_vm1 = vcmask 1044480   ;;  %v270_v8 = vld [vmem:[%s203_s8] sm:$0xff]  ;;  %vm271_vm2 = vcmask 171008  }
  0x56   : > { %s468_s29 = sshll.u32 %s950_s1, 3  ;;  %s474_s9 = sshll.u32 %s800_s25, 3  ;;  %vm305_vm3 = vcmask 228352  }
  0x57   : > { %260 = vrot.lane.b32.xlu1 %v253_v1, %s735_s5  ;;  %s333_s13 = scalar_lea.hbm %s1012_s3, %s474_s9  ;;  %s239_s10 = scalar_lea.vmem [#allocation9], %s468_s29 }
  0x58   : > { %s335_s17 = sshll.u32 %s239_s10, 4  ;;  %s337_s15 = sshll.u32 %s333_s13, 4  ;;  %s336_s17 = int_to_ptr.vmem [resolvable:$true] %s335_s17  ;;  %s338_s15 = int_to_ptr.hbm [resolvable:$true] %s337_s15 }
  0x59   : > { %s319_s8 = scalar_lea.sflag [#allocation6], %s950_s1  ;;  %s649_s12 = sshra.s32 %s338_s15, 4  ;;  %s650_s12 = int_to_ptr.hbm [resolvable:$true] %s649_s12 }
  0x5a   : > { %s651_s16 = scalar_lea.hbm %s650_s12, 8  ;;  %s655_s5 = scalar_lea.hbm %s1012_s3, 16 }
  0x5b   : > { %p652_p7 = scmp.ne.s32.totalorder %s650_s12, %s651_s16  ;;  %p656_p0 = scmp.lt.s32.totalorder %s650_s12, %s1012_s3 }
  0x5c   : > { %p657_p10 = scmp.lt.s32.totalorder %s655_s5, %s651_s16 }
  0x5d   : > { %257 = vrot.lane.b32.xlu0 %v251_v0, %s736_s22  ;;  %p653_p12 = pnand %p652_p7, %p909_p9 }
  0x5e   : > { %p658_p11 = por %p657_p10, %p656_p0 }
  0x5f   : > { %254 = vrot.lane.b32.xlu1 %v253_v1, %s737_s28  ;;  %p654_p8 = pneg %p653_p12 }
  0x61   : > { %p659_p4 = pnand %p658_p11, %p654_p8 }
  0xc7   : > { %v264_v2 = vpop.permute.xlu0 %263 }
  0xc8   : > { %v269_v3 = vsel %vm266_vm0, %v264_v2, 1.0 }
  0xc9   : > { %470 = vmatpush.msk.msra.mxu0 %vm275_vm1, %v269_v3  ;;  %v261_v4 = vpop.permute.xlu1 %260 }
  0xcf   : > { %v258_v5 = vpop.permute.xlu0 %257 }
  0xd0   : > { %v268_v6 = vsel %vm266_vm0, %v258_v5, %v261_v4 }
  0xd1   : > { %293 = vmatpush.msra.mxu0 %v268_v6  ;;  %v255_v7 = vpop.permute.xlu1 %254 }
  0xd2   : > { %v267_v9 = vsel %vm266_vm0, %v251_v0, %v255_v7 }
  0xd3   : > { %294 = vmatpush.msra.mxu0 %v267_v9 }
  0xd4   : > { %471 = vmatmul.msk.f32.vlgmr.msra.gmra.mxu0 %vm271_vm2, %v270_v8 }
 0x151   : > { %v296_v10 = vpop.f32.mrf.mxu0 }
 0x152   : > { %v300_v11 = vmin.f32 %v296_v10, 0.0  ;;  %vm299_vm4 = vcmp.gt.f32.partialorder %v296_v10, 0.0 }
 0x154   : > { %v301_v12 = vmul.f32 1.442695, %v300_v11 }
 0x156   : > { %561 = vpow2.f32 %v301_v12 }
 0x15c   : > { %v562_v13 = vpop.eup %561 }
 0x15d   : > { %v472_v14 = vadd.f32 -1.0, %v562_v13 }
 0x15f   : > { %v304_v15 = vsel %vm299_vm4, %v296_v10, %v472_v14 }
 0x160   : > { %v307_v16 = vsel %vm305_vm3, %v304_v15, 0.0  ;;  %306 = vst.msk [vmem:[%s239_s10] sm:$0xff] %vm305_vm3, %v304_v15 }
 0x161   : > { %308 = vadd.xlane.f32.xlu2 %v307_v16 }
 0x162   : > { %662 = shalt.err (!%p659_p4)
}
 0x163   : > { %483 = dma.vmem_to_hbm [thread:$0]  (%p909_p9), %s336_s17, 128, %s338_s15, %s319_s8   ;;  %v310_v17 = vmul.f32 %v304_v15, %v304_v15  ;;  %vm314_vm5 = vcmask 7168   ;;  %vm316_vm6 = vcmask 15360  }
 0x164   : > { %p247_p6 = scmp.lt.s32.totalorder %s800_s25, 1 }
 0x165   : > { %v311_v18 = vsel %vm305_vm3, %v310_v17, 0.0 }
 0x166   : > { %s1045_s25 = smov (!%p247_p6, %s800_s25), 1 }
 0x167   : > { %s469_s1 = sshll.u32 %s1045_s25, 3 }
 0x168   : > { %s250_s11 = scalar_lea.vmem %s1013_s4, %s469_s1 }
 0x169   : > { %312 = vadd.xlane.f32.xlu2 %v311_v18 }
 0x1d4   : > { %v309_v19 = vpop.xlane.xlu2 %308 }
 0x1dc   : > { %v313_v20 = vpop.xlane.xlu2 %312 }
 0x1dd   : > { %v315_v21 = vsel %vm314_vm5, %v309_v19, %v313_v20 }
 0x1de   : > { %317 = vst.msk [vmem:[%s250_s11] sm:$0xff] %vm316_vm6, %v315_v21 }
 0x1df PF: > { %s352_s30 = sand.u32 1, %s707_s19   ;;  %p1031_p9 = scmp.ge.s32.totalorder %s731_s24, 2 }
 0x1e0   : > { %s353_s14 = scalar_lea.sflag [#allocation6], %s352_s30 }
 0x1e1   : > { %p495_p3 = pnand %p1031_p9, %p913_p1 }
 0x1e3   : > { %p496_p2 = pneg %p495_p3 }
 0x1e5   : > { %702 = dma.done.wait (%p496_p2), %s353_s14, 128  }
 0x1e6   : > { %704 = vsyncadd (%p496_p2), %s353_s14, 4294967168  ;;  %s1032_s25 = sld [smem:[#allocation16_spill]]  ;;  %p29_p5 = scmp.ge.s32.totalorder %s803_s26, 4  }
 0x1e7   : > { %s1033_s19 = smov %s711_s20  ;;  %s1034_s20 = smov %s715_s21 }
 0x1e8   : > { %s1035_s21 = smov %s885_s6  ;;  %s1036_s22 = smov %s723_s0 }
 0x1e9   : > { %s1037_s0 = smov %s727_s23  ;;  %s1039_s24 = smov %s803_s26 }
 0x1ea   :  { %31 = sbr.rel (!%p29_p5) target bundleno = 15 (0xf), region = 98 }
 0x1ec   : > { %s1038_s23 = smov %s1032_s25 }
 0x1ef   :  { %366 = vsyncpa [#allocation5], 1 }
 0x1f0   :  { %368 = vsyncpa [#allocation5 + $0x1], 1 }
 0x1f1   :  { %369 = vsyncpa [#allocation8], 1 }
 0x1f2   :  { %371 = vsyncpa [#allocation8 + $0x1], 1 }
 0x1f3   :  { %372 = vsyncpa [#allocation6], 1 }
 0x1f4   :  { %374 = vsyncpa [#allocation6 + $0x1], 1 }

</bundles_post_ra>
